<compile_context>
chip_gen: v7x
topology: tpu7x:2x2x1
jax: 0.10.0
libtpu: 0.0.40
codegen_flags: <defaults>
</compile_context>

<pallas_src>
import jax
import jax.numpy as jnp
from jax.experimental import pallas as pl
from jax.experimental.pallas import tpu as pltpu

IN_DIM = 7
HID = 32
OUT_DIM = 14
N_LAYERS = 5


def _round_up(x, m):
    return ((x + m - 1) // m) * m


def mlp_kernel(x_ref, w_ref, b_ref, o_ref, xpad_ref):
    """One (TM, IN_DIM) batch tile through the whole MLP.

    x_ref:    (TM, IN_DIM)          f32, raw features
    w_ref:    (N_LAYERS, HID, HID)  f32, each layer zero-padded to 32x32
    b_ref:    (N_LAYERS, 1, HID)    f32, zero-padded biases
    o_ref:    (TM, OUT_DIM)         f32
    xpad_ref: (TM, HID)             f32 VMEM scratch (feature zero-pad 7->32)
    """
    # Zero-pad the activation tile to 32 lanes inside VMEM so every matmul is
    # an aligned (TM,32)x(32,32) MXU op.  Padding lanes contribute exactly 0.
    xpad_ref[...] = jnp.zeros_like(xpad_ref)
    xpad_ref[:, :IN_DIM] = x_ref[...]

    h = xpad_ref[...]
    for layer in range(N_LAYERS - 1):  # 4x (Linear + ReLU), statically unrolled
        h = jnp.dot(h, w_ref[layer], preferred_element_type=jnp.float32)
        h = jnp.maximum(h + b_ref[layer], 0.0)
    # Final Linear (no ReLU); padded output columns 14:32 are exactly zero.
    h = jnp.dot(h, w_ref[N_LAYERS - 1], preferred_element_type=jnp.float32)
    h = h + b_ref[N_LAYERS - 1]
    o_ref[...] = h[:, :OUT_DIM].astype(o_ref.dtype)


def init_params(key):
    """PyTorch-style init: U(-1/sqrt(fan_in), 1/sqrt(fan_in)).

    Weights stored as (in_features, out_features); biases as (1, out_features)."""
    dims = [(IN_DIM, HID), (HID, HID), (HID, HID), (HID, HID), (HID, OUT_DIM)]
    params = []
    for fan_in, fan_out in dims:
        key, kw, kb = jax.random.split(key, 3)
        bound = 1.0 / (fan_in ** 0.5)
        w = jax.random.uniform(kw, (fan_in, fan_out), jnp.float32, -bound, bound)
        b = jax.random.uniform(kb, (1, fan_out), jnp.float32, -bound, bound)
        params.append((w, b))
    return params


def pack_params(params):
    """Zero-pad every layer to (HID, HID)/(1, HID) and stack into 2 operands."""
    w_packed = jnp.zeros((N_LAYERS, HID, HID), jnp.float32)
    b_packed = jnp.zeros((N_LAYERS, 1, HID), jnp.float32)
    for l, (w, b) in enumerate(params):
        fan_in, fan_out = w.shape
        w_packed = w_packed.at[l, :fan_in, :fan_out].set(w)
        b_packed = b_packed.at[l, :, :fan_out].set(b)
    return w_packed, b_packed


def neural_network_forward(x, w_packed, b_packed, *, tm=256):
    # nn.Flatten: collapse any trailing dims into the feature axis.
    x = x.reshape(x.shape[0], -1).astype(jnp.float32)
    B = x.shape[0]

    # Adaptive batch tile: multiple of 8 sublanes, no useless padding for tiny
    # batches, large tiles for big batches (amortizes per-grid-step overhead).
    tm_eff = min(tm, _round_up(max(B, 1), 8))
    n_tiles = pl.cdiv(B, tm_eff)
    b_pad = n_tiles * tm_eff
    x_pad = x if b_pad == B else jnp.pad(x, ((0, b_pad - B), (0, 0)))

    flops = 2 * b_pad * (IN_DIM * HID + (N_LAYERS - 1) * HID * HID)
    bytes_accessed = 4 * (b_pad * IN_DIM + b_pad * OUT_DIM
                          + N_LAYERS * HID * HID + N_LAYERS * HID)

    out = pl.pallas_call(
        mlp_kernel,
        out_shape=jax.ShapeDtypeStruct((b_pad, OUT_DIM), jnp.float32),
        grid=(n_tiles,),
        in_specs=[
            # Activations: new batch tile per grid step (auto double-buffered).
            pl.BlockSpec((tm_eff, IN_DIM), lambda i: (i, 0)),
            # Packed weights / biases: constant index -> resident in VMEM.
            pl.BlockSpec((N_LAYERS, HID, HID), lambda i: (0, 0, 0)),
            pl.BlockSpec((N_LAYERS, 1, HID), lambda i: (0, 0, 0)),
        ],
        out_specs=pl.BlockSpec((tm_eff, OUT_DIM), lambda i: (i, 0)),
        scratch_shapes=[pltpu.VMEM((tm_eff, HID), jnp.float32)],
        compiler_params=pltpu.CompilerParams(
            dimension_semantics=("parallel",)),  # megacore sharding on v7x
        cost_estimate=pl.CostEstimate(
            flops=flops, transcendentals=0, bytes_accessed=bytes_accessed),
    )(x_pad, w_packed, b_packed)
    return out[:B]


def reference_forward(x, params):
    h = x.reshape(x.shape[0], -1)
    for i, (w, b) in enumerate(params):
        h = h @ w + b
        if i < len(params) - 1:
            h = jnp.maximum(h, 0.0)
    return h


if __name__ == "__main__":
    key = jax.random.PRNGKey(0)
    kp, kx1, kx2 = jax.random.split(key, 3)

    params = init_params(kp)
    w_packed, b_packed = pack_params(params)

    # Small batch (single 8-row tile, no useless padding).
    x_small = jax.random.normal(kx1, (8, IN_DIM), jnp.float32)
    out_small = jax.block_until_ready(
        neural_network_forward(x_small, w_packed, b_packed))
    ref_small = reference_forward(x_small, params)
    assert out_small.shape == (8, OUT_DIM), out_small.shape
    assert jnp.allclose(out_small, ref_small, atol=1e-5, rtol=1e-5), \
        "mismatch vs reference (small batch)"

    # Ragged batch forced onto multiple grid tiles (exercises pipelining +
    # batch padding + the parallel grid axis).
    x_big = jax.random.normal(kx2, (200, IN_DIM), jnp.float32)
    out_big = jax.block_until_ready(
        neural_network_forward(x_big, w_packed, b_packed, tm=64))
    ref_big = reference_forward(x_big, params)
    assert out_big.shape == (200, OUT_DIM), out_big.shape
    assert jnp.allclose(out_big, ref_big, atol=1e-5, rtol=1e-5), \
        "mismatch vs reference (multi-tile batch)"

    print("KERNEL_OK")
</pallas_src>

<mosaic_0001>
module attributes {stable_mosaic.version = 11 : i64} {
  func.func @mlp_kernel(%arg0: i32, %arg1: memref<8x7xf32, #tpu.memory_space<vmem>>, %arg2: memref<5x32x32xf32, #tpu.memory_space<vmem>>, %arg3: memref<5x1x32xf32, #tpu.memory_space<vmem>>, %arg4: memref<8x14xf32, #tpu.memory_space<vmem>>, %arg5: memref<8x32xf32, #tpu.memory_space<vmem>>) attributes {dimension_semantics = [#tpu.dimension_semantics<parallel>], iteration_bounds = array<i64: 1>, scalar_prefetch = 0 : i64, scratch_operands = 1 : i64, tpu.core_type = #tpu.core_type<tc>, window_params = [{transform_indices = @transform_0, window_bounds = array<i64: 8, 7>}, {pipeline_mode = #tpu.pipeline_mode<synchronous>, transform_indices = @transform_1, window_bounds = array<i64: 5, 32, 32>}, {pipeline_mode = #tpu.pipeline_mode<synchronous>, transform_indices = @transform_2, window_bounds = array<i64: 5, 1, 32>}, {transform_indices = @transform_3, window_bounds = array<i64: 8, 14>}]} {
    %cst = arith.constant 0.000000e+00 : f32
    %0 = vector.broadcast %cst : f32 to vector<8x32xf32>
    %c0 = arith.constant 0 : index
    %c0_0 = arith.constant 0 : index
    %1 = vector.load %arg5[%c0, %c0_0] : memref<8x32xf32, #tpu.memory_space<vmem>>, vector<8x32xf32>
    tpu.vector_store %arg5[%c0, %c0_0], %0 {strides = array<i32>} : memref<8x32xf32, #tpu.memory_space<vmem>>, vector<8x32xf32>,
    %c0_1 = arith.constant 0 : index
    %c0_2 = arith.constant 0 : index
    %2 = vector.load %arg1[%c0_1, %c0_2] : memref<8x7xf32, #tpu.memory_space<vmem>>, vector<8x7xf32>
    %c0_3 = arith.constant 0 : index
    %c0_4 = arith.constant 0 : index
    %3 = vector.load %arg5[%c0_3, %c0_4] : memref<8x32xf32, #tpu.memory_space<vmem>>, vector<8x7xf32>
    tpu.vector_store %arg5[%c0_3, %c0_4], %2 {strides = array<i32>} : memref<8x32xf32, #tpu.memory_space<vmem>>, vector<8x7xf32>,
    %c0_5 = arith.constant 0 : index
    %c0_6 = arith.constant 0 : index
    %4 = vector.load %arg5[%c0_5, %c0_6] : memref<8x32xf32, #tpu.memory_space<vmem>>, vector<8x32xf32>
    %c0_7 = arith.constant 0 : index
    %c0_8 = arith.constant 0 : index
    %c0_9 = arith.constant 0 : index
    %5 = vector.load %arg2[%c0_7, %c0_8, %c0_9] : memref<5x32x32xf32, #tpu.memory_space<vmem>>, vector<1x32x32xf32>
    %6 = vector.shape_cast %5 : vector<1x32x32xf32> to vector<32x32xf32>
    %cst_10 = arith.constant dense<0.000000e+00> : vector<8x32xf32>
    %7 = tpu.matmul %4, %6, %cst_10 {dimension_numbers = #tpu.dot_dimension_numbers<[1], [0], [0], [1], [0, 0, 1, 1], [], []>} : vector<8x32xf32>, vector<32x32xf32>, vector<8x32xf32> -> vector<8x32xf32>
    %c0_11 = arith.constant 0 : index
    %c0_12 = arith.constant 0 : index
    %c0_13 = arith.constant 0 : index
    %8 = vector.load %arg3[%c0_11, %c0_12, %c0_13] : memref<5x1x32xf32, #tpu.memory_space<vmem>>, vector<1x1x32xf32>
    %9 = vector.shape_cast %8 : vector<1x1x32xf32> to vector<1x32xf32>
    %10 = vector.broadcast %9 : vector<1x32xf32> to vector<8x32xf32>
    %11 = arith.addf %7, %10 : vector<8x32xf32>
    %cst_14 = arith.constant 0.000000e+00 : f32
    %12 = vector.broadcast %cst_14 : f32 to vector<8x32xf32>
    %13 = arith.maximumf %11, %12 : vector<8x32xf32>
    %c1 = arith.constant 1 : index
    %c0_15 = arith.constant 0 : index
    %c0_16 = arith.constant 0 : index
    %14 = vector.load %arg2[%c1, %c0_15, %c0_16] : memref<5x32x32xf32, #tpu.memory_space<vmem>>, vector<1x32x32xf32>
    %15 = vector.shape_cast %14 : vector<1x32x32xf32> to vector<32x32xf32>
    %cst_17 = arith.constant dense<0.000000e+00> : vector<8x32xf32>
    %16 = tpu.matmul %13, %15, %cst_17 {dimension_numbers = #tpu.dot_dimension_numbers<[1], [0], [0], [1], [0, 0, 1, 1], [], []>} : vector<8x32xf32>, vector<32x32xf32>, vector<8x32xf32> -> vector<8x32xf32>
    %c1_18 = arith.constant 1 : index
    %c0_19 = arith.constant 0 : index
    %c0_20 = arith.constant 0 : index
    %17 = vector.load %arg3[%c1_18, %c0_19, %c0_20] : memref<5x1x32xf32, #tpu.memory_space<vmem>>, vector<1x1x32xf32>
    %18 = vector.shape_cast %17 : vector<1x1x32xf32> to vector<1x32xf32>
    %19 = vector.broadcast %18 : vector<1x32xf32> to vector<8x32xf32>
    %20 = arith.addf %16, %19 : vector<8x32xf32>
    %cst_21 = arith.constant 0.000000e+00 : f32
    %21 = vector.broadcast %cst_21 : f32 to vector<8x32xf32>
    %22 = arith.maximumf %20, %21 : vector<8x32xf32>
    %c2 = arith.constant 2 : index
    %c0_22 = arith.constant 0 : index
    %c0_23 = arith.constant 0 : index
    %23 = vector.load %arg2[%c2, %c0_22, %c0_23] : memref<5x32x32xf32, #tpu.memory_space<vmem>>, vector<1x32x32xf32>
    %24 = vector.shape_cast %23 : vector<1x32x32xf32> to vector<32x32xf32>
    %cst_24 = arith.constant dense<0.000000e+00> : vector<8x32xf32>
    %25 = tpu.matmul %22, %24, %cst_24 {dimension_numbers = #tpu.dot_dimension_numbers<[1], [0], [0], [1], [0, 0, 1, 1], [], []>} : vector<8x32xf32>, vector<32x32xf32>, vector<8x32xf32> -> vector<8x32xf32>
    %c2_25 = arith.constant 2 : index
    %c0_26 = arith.constant 0 : index
    %c0_27 = arith.constant 0 : index
    %26 = vector.load %arg3[%c2_25, %c0_26, %c0_27] : memref<5x1x32xf32, #tpu.memory_space<vmem>>, vector<1x1x32xf32>
    %27 = vector.shape_cast %26 : vector<1x1x32xf32> to vector<1x32xf32>
    %28 = vector.broadcast %27 : vector<1x32xf32> to vector<8x32xf32>
    %29 = arith.addf %25, %28 : vector<8x32xf32>
    %cst_28 = arith.constant 0.000000e+00 : f32
    %30 = vector.broadcast %cst_28 : f32 to vector<8x32xf32>
    %31 = arith.maximumf %29, %30 : vector<8x32xf32>
    %c3 = arith.constant 3 : index
    %c0_29 = arith.constant 0 : index
    %c0_30 = arith.constant 0 : index
    %32 = vector.load %arg2[%c3, %c0_29, %c0_30] : memref<5x32x32xf32, #tpu.memory_space<vmem>>, vector<1x32x32xf32>
    %33 = vector.shape_cast %32 : vector<1x32x32xf32> to vector<32x32xf32>
    %cst_31 = arith.constant dense<0.000000e+00> : vector<8x32xf32>
    %34 = tpu.matmul %31, %33, %cst_31 {dimension_numbers = #tpu.dot_dimension_numbers<[1], [0], [0], [1], [0, 0, 1, 1], [], []>} : vector<8x32xf32>, vector<32x32xf32>, vector<8x32xf32> -> vector<8x32xf32>
    %c3_32 = arith.constant 3 : index
    %c0_33 = arith.constant 0 : index
    %c0_34 = arith.constant 0 : index
    %35 = vector.load %arg3[%c3_32, %c0_33, %c0_34] : memref<5x1x32xf32, #tpu.memory_space<vmem>>, vector<1x1x32xf32>
    %36 = vector.shape_cast %35 : vector<1x1x32xf32> to vector<1x32xf32>
    %37 = vector.broadcast %36 : vector<1x32xf32> to vector<8x32xf32>
    %38 = arith.addf %34, %37 : vector<8x32xf32>
    %cst_35 = arith.constant 0.000000e+00 : f32
    %39 = vector.broadcast %cst_35 : f32 to vector<8x32xf32>
    %40 = arith.maximumf %38, %39 : vector<8x32xf32>
    %c4 = arith.constant 4 : index
    %c0_36 = arith.constant 0 : index
    %c0_37 = arith.constant 0 : index
    %41 = vector.load %arg2[%c4, %c0_36, %c0_37] : memref<5x32x32xf32, #tpu.memory_space<vmem>>, vector<1x32x32xf32>
    %42 = vector.shape_cast %41 : vector<1x32x32xf32> to vector<32x32xf32>
    %cst_38 = arith.constant dense<0.000000e+00> : vector<8x32xf32>
    %43 = tpu.matmul %40, %42, %cst_38 {dimension_numbers = #tpu.dot_dimension_numbers<[1], [0], [0], [1], [0, 0, 1, 1], [], []>} : vector<8x32xf32>, vector<32x32xf32>, vector<8x32xf32> -> vector<8x32xf32>
    %c4_39 = arith.constant 4 : index
    %c0_40 = arith.constant 0 : index
    %c0_41 = arith.constant 0 : index
    %44 = vector.load %arg3[%c4_39, %c0_40, %c0_41] : memref<5x1x32xf32, #tpu.memory_space<vmem>>, vector<1x1x32xf32>
    %45 = vector.shape_cast %44 : vector<1x1x32xf32> to vector<1x32xf32>
    %46 = vector.broadcast %45 : vector<1x32xf32> to vector<8x32xf32>
    %47 = arith.addf %43, %46 : vector<8x32xf32>
    %48 = vector.extract_strided_slice %47 {offsets = [0, 0], sizes = [8, 14], strides = [1, 1]} : vector<8x32xf32> to vector<8x14xf32>
    %c0_42 = arith.constant 0 : index
    %c0_43 = arith.constant 0 : index
    %49 = vector.load %arg4[%c0_42, %c0_43] : memref<8x14xf32, #tpu.memory_space<vmem>>, vector<8x14xf32>
    tpu.vector_store %arg4[%c0_42, %c0_43], %48 {strides = array<i32>} : memref<8x14xf32, #tpu.memory_space<vmem>>, vector<8x14xf32>,
    return
  }
  func.func @transform_0(%arg0: i32) -> (i32, i32) {
    %c0_i32 = arith.constant 0 : i32
    %c0_i32_0 = arith.constant 0 : i32
    return %arg0, %c0_i32 : i32, i32
  }
  func.func @transform_1(%arg0: i32) -> (i32, i32, i32) {
    %c0_i32 = arith.constant 0 : i32
    %c0_i32_0 = arith.constant 0 : i32
    %c0_i32_1 = arith.constant 0 : i32
    %c0_i32_2 = arith.constant 0 : i32
    return %c0_i32, %c0_i32_0, %c0_i32_1 : i32, i32, i32
  }
  func.func @transform_2(%arg0: i32) -> (i32, i32, i32) {
    %c0_i32 = arith.constant 0 : i32
    %c0_i32_0 = arith.constant 0 : i32
    %c0_i32_1 = arith.constant 0 : i32
    %c0_i32_2 = arith.constant 0 : i32
    return %c0_i32, %c0_i32_0, %c0_i32_1 : i32, i32, i32
  }
  func.func @transform_3(%arg0: i32) -> (i32, i32) {
    %c0_i32 = arith.constant 0 : i32
    %c0_i32_0 = arith.constant 0 : i32
    return %arg0, %c0_i32 : i32, i32
  }
}

</mosaic_0001>

<bundles_post_ra>
// kernel: tpu_custom_call.1
= control target key start
LH: loop header
LB: loop body
LE: loop exit
PB: predicated region body
PF: predicated region fallthrough
CT: control target
= control target key end

     0   :  { %8 = vsyncpa [#allocation4], 0  ;;  %s808_s0 = inlined_call_operand.hbm [shape: f32[8,7], index: 0, kind: input, shape index: {}]   ;;  %s809_s1 = inlined_call_operand.hbm [shape: f32[5,32,32], index: 1, kind: input, shape index: {}]   ;;  %s810_s2 = inlined_call_operand.vmem [shape: f32[5,1,32], index: 2, kind: input, shape index: {}]   ;;  %s811_s3 = inlined_call_operand.hbm [shape: f32[8,14], index: 3, kind: output, shape index: {}]  }
   0x1   :  { %9 = vsyncpa [#allocation7], 0 }
   0x2   :  { %10 = vsyncpa [#allocation5], 0  ;;  %s701_s12 = smov [#allocation3]   ;;  %s702_s14 = smov [#allocation6]  }
   0x3   :  { %s17_s13 = sshll.u32 %s701_s12, 4  ;;  %s26_s15 = sshll.u32 %s702_s14, 4  ;;  %s18_s13 = int_to_ptr.vmem [resolvable:$true] %s17_s13  ;;  %s729_s15 = int_to_ptr.vmem [resolvable:$true] %s26_s15 }
   0x4   :  { %s629_s18 = scalar_lea.hbm %s808_s0, 128 }
   0x5   :  { %p630_p0 = scmp.ne.s32.totalorder %s808_s0, %s629_s18  ;;  %p633_p1 = scmp.lt.u32.totalorder %s629_s18, %s808_s0 }
   0x7   :  { %p635_p2 = pnand %p633_p1, %p630_p0 }
   0x9   :  { %638 = shalt.err (!%p635_p2)
}
   0xa   :  { %s639_s23 = scalar_lea.vmem %s18_s13, 128  ;;  %p644_p4 = scmp.lt.s32.totalorder %s18_s13, %s18_s13 }
   0xb   :  { %p640_p3 = scmp.ne.s32.totalorder %s18_s13, %s639_s23  ;;  %p645_p5 = scmp.lt.s32.totalorder %s639_s23, %s639_s23 }
   0xd   :  { %p646_p6 = por %p645_p5, %p644_p4 }
   0xf   :  { %p647_p7 = pnand %p646_p6, %p640_p3 }
  0x11   :  { %650 = shalt.err (!%p647_p7)
}
  0x12   :  { %20 = dma.hbm_to_vmem [thread:$0]  %s808_s0, 128, %s18_s13, [#allocation4]  }
  0x13   :  { %s651_s28 = scalar_lea.hbm %s809_s1, 2560 }
  0x14   :  { %p652_p8 = scmp.ne.s32.totalorder %s809_s1, %s651_s28  ;;  %p655_p9 = scmp.lt.u32.totalorder %s651_s28, %s809_s1 }
  0x16   :  { %p657_p10 = pnand %p655_p9, %p652_p8 }
  0x18   :  { %660 = shalt.err (!%p657_p10)
}
  0x19   :  { %s661_s6 = scalar_lea.vmem %s729_s15, 2560  ;;  %p666_p12 = scmp.lt.s32.totalorder %s729_s15, %s729_s15 }
  0x1a   :  { %p662_p11 = scmp.ne.s32.totalorder %s729_s15, %s661_s6  ;;  %p667_p13 = scmp.lt.s32.totalorder %s661_s6, %s661_s6 }
  0x1c   :  { %p668_p0 = por %p667_p13, %p666_p12 }
  0x1e   :  { %p669_p1 = pnand %p668_p0, %p662_p11 }
  0x20   :  { %672 = shalt.err (!%p669_p1)
}
  0x21   :  { %s703_s0 = smov 128   ;;  %s704_s7 = smov 8  }
  0x22   :  { %32 = dma.hbm_to_vmem [thread:$0]  %s809_s1, 2560, %s729_s15, [#allocation7], %s703_s0, %s703_s0, %s704_s7  }
  0x23   :  { %695 = dma.done.wait [#allocation4], 128  }
  0x24   :  { %696 = vsyncadd [#allocation4], 4294967168 }
  0x25   :  { %697 = dma.done.wait [#allocation7], 2560  }
  0x26   :  { %698 = vsyncadd [#allocation7], 4294964736  ;;  %vm41_vm0 = vcmask 261120   ;;  %v705_v0 = vmov 0.0|0.0   ;;  %vm706_vm1 = vmmov 0   ;;  %v707_v1 = vmov 0.0  }
  0x27   :  { %591 = vmatprep.subr.bf16.mxu0 %v705_v0  ;;  %544 = vmatprep.mubr.msk.f32.mxu0 %vm706_vm1, %v707_v1  ;;  %42 = vst.msk [vmem:[#allocation2] sm:$0xff] %vm41_vm0, %v707_v1  ;;  %vm44_vm2 = vcmask 56320   ;;  %v47_v2 = vld [vmem:[#allocation6] sm:$0xff]  ;;  %v48_v3 = vld [vmem:[#allocation6 + $0x8] sm:$0xff]  ;;  %v49_v4 = vld [vmem:[#allocation6 + $0x10] sm:$0xff]  ;;  %s708_s19 = smov [#allocation8]  }
  0x28   :  { %597 = vmatprep.subr.bf16.mxu1 %v705_v0  ;;  %555 = vmatprep.mubr.msk.f32.mxu1 %vm706_vm1, %v707_v1  ;;  %v592_v5 = vpack.c.bf16 %v48_v3, %v47_v2  ;;  %v50_v6 = vld [vmem:[#allocation6 + $0x18] sm:$0xff]  ;;  %v133_v8 = vld [vmem:[#allocation6 + $0x20] sm:$0xff]  ;;  %v134_v9 = vld [vmem:[#allocation6 + $0x28] sm:$0xff]  ;;  %s487_s20 = sshll.u32 %s708_s19, 4  ;;  %vm479_vm3 = vcmask 113664   ;;  %s488_s20 = int_to_ptr.vmem [resolvable:$true] %s487_s20 }
  0x29   :  { %v43_v7 = vld [vmem:[#allocation3] sm:$0xff]  ;;  %v595_v10 = vpack.c.bf16 %v50_v6, %v49_v4  ;;  %v598_v11 = vpack.c.bf16 %v134_v9, %v133_v8  ;;  %v135_v13 = vld [vmem:[#allocation6 + $0x30] sm:$0xff]  ;;  %v220_v16 = vld [vmem:[#allocation6 + $0x40] sm:$0xff]  ;;  %s673_s21 = scalar_lea.vmem %s488_s20, 128  ;;  %p678_p3 = scmp.lt.s32.totalorder %s488_s20, %s488_s20 }
  0x2a   :  { %45 = vst.msk [vmem:[#allocation2] sm:$0xff] %vm44_vm2, %v43_v7  ;;  %593 = vmatpush3.bf16.msra.mxu0 %v592_v5  ;;  %v136_v14 = vld [vmem:[#allocation6 + $0x38] sm:$0xff]  ;;  %v221_v17 = vld [vmem:[#allocation6 + $0x48] sm:$0xff]  ;;  %v497_v19 = vld [vmem:[%s810_s2] ss:$0 sm:$0xff]  ;;  %p674_p2 = scmp.ne.s32.totalorder %s488_s20, %s673_s21  ;;  %p679_p4 = scmp.lt.s32.totalorder %s673_s21, %s673_s21 }
  0x2b   :  { %594 = vmatprep.subr.bf16.mxu0 %v705_v0  ;;  %599 = vmatpush3.bf16.msra.mxu1 %v598_v11  ;;  %v601_v15 = vpack.c.bf16 %v136_v14, %v135_v13  ;;  %v604_v18 = vpack.c.bf16 %v221_v17, %v220_v16  ;;  %v222_v24 = vld [vmem:[#allocation6 + $0x50] sm:$0xff]  ;;  %v223_v25 = vld [vmem:[#allocation6 + $0x58] sm:$0xff]  ;;  %v307_v27 = vld [vmem:[#allocation6 + $0x60] sm:$0xff] }
  0x2c   :  { %600 = vmatprep.subr.bf16.mxu1 %v705_v0  ;;  %v607_v26 = vpack.c.bf16 %v223_v25, %v222_v24  ;;  %v308_v28 = vld [vmem:[#allocation6 + $0x68] sm:$0xff]  ;;  %v500_v30 = vld [vmem:[%s810_s2 + $0x1] ss:$0 sm:$0xff]  ;;  %v310_v36 = vld [vmem:[#allocation6 + $0x78] sm:$0xff]  ;;  %p680_p5 = por %p679_p4, %p678_p3 }
  0x2d   :  { %v610_v29 = vpack.c.bf16 %v308_v28, %v307_v27  ;;  %v309_v35 = vld [vmem:[#allocation6 + $0x70] sm:$0xff]  ;;  %v394_v38 = vld [vmem:[#allocation6 + $0x80] sm:$0xff]  ;;  %v395_v39 = vld [vmem:[#allocation6 + $0x88] sm:$0xff] }
  0x2e   :  { %596 = vmatpush3.bf16.msra.mxu0 %v595_v10  ;;  %v613_v37 = vpack.c.bf16 %v310_v36, %v309_v35  ;;  %v616_v40 = vpack.c.bf16 %v395_v39, %v394_v38  ;;  %v503_v41 = vld [vmem:[%s810_s2 + $0x2] ss:$0 sm:$0xff]  ;;  %v397_v47 = vld [vmem:[#allocation6 + $0x98] sm:$0xff]  ;;  %v506_v49 = vld [vmem:[%s810_s2 + $0x3] ss:$0 sm:$0xff]  ;;  %p681_p6 = pnand %p680_p5, %p674_p2 }
  0x2f   :  { %603 = vmatprep.subr.bf16.mxu0 %v705_v0  ;;  %602 = vmatpush3.bf16.msra.mxu1 %v601_v15  ;;  %v396_v46 = vld [vmem:[#allocation6 + $0x90] sm:$0xff] }
  0x30   :  { %609 = vmatprep.subr.bf16.mxu1 %v705_v0  ;;  %v619_v48 = vpack.c.bf16 %v397_v47, %v396_v46  ;;  %v509_v54 = vld [vmem:[%s810_s2 + $0x4] ss:$0 sm:$0xff] }
  0x31   :  { %v46_v12 = vld [vmem:[#allocation2] sm:$0xff] }
  0x32   :  { %545 = vmatmul.mubr.msk.f32.vlgmr.msra.gmra.mrb[0].mxu0 %vm41_vm0, %v46_v12 }
  0x33   :  { %566 = vmatprep.mubr.msk.f32.mxu0 %vm706_vm1, %v707_v1  ;;  %605 = vmatpush3.bf16.msra.mxu0 %v604_v18 }
  0x34   :  { %606 = vmatprep.subr.bf16.mxu0 %v705_v0 }
  0x37   :  { %608 = vmatpush3.bf16.msra.mxu0 %v607_v26 }
  0x38   :  { %615 = vmatprep.subr.bf16.mxu0 %v705_v0 }
 0x105   :  { %v127_v20 = vpop.f32.mrb[0].mxu0 }
 0x106   :  { %v128_v21 = vadd.f32 %v497_v19, %v127_v20  ;;  %v546_v22 = vpop.f32.mrb[1].mxu0 }
 0x108   :  { %v131_v23 = vmax.f32 %v128_v21, 0.0 }
 0x10a   :  { %556 = vmatmul.mubr.msk.f32.vlgmr.msra.gmra.mrb[0].mxu1 %vm41_vm0, %v131_v23 }
 0x10b   :  { %577 = vmatprep.mubr.msk.f32.mxu1 %vm706_vm1, %v707_v1  ;;  %611 = vmatpush3.bf16.msra.mxu1 %v610_v29 }
 0x10c   :  { %612 = vmatprep.subr.bf16.mxu1 %v705_v0 }
 0x10f   :  { %614 = vmatpush3.bf16.msra.mxu1 %v613_v37 }
 0x1dd   :  { %v214_v31 = vpop.f32.mrb[0].mxu1 }
 0x1de   :  { %v215_v32 = vadd.f32 %v500_v30, %v214_v31  ;;  %v557_v33 = vpop.f32.mrb[1].mxu1 }
 0x1e0   :  { %v218_v34 = vmax.f32 %v215_v32, 0.0 }
 0x1e2   :  { %567 = vmatmul.mubr.msk.f32.vlgmr.msra.gmra.mrb[2].mxu0 %vm41_vm0, %v218_v34 }
 0x1e3   :  { %588 = vmatprep.mubr.msk.f32.mxu0 %vm706_vm1, %v707_v1  ;;  %617 = vmatpush3.bf16.msra.mxu0 %v616_v40 }
 0x1e4   :  { %618 = vmatprep.subr.bf16.mxu0 %v705_v0 }
 0x1e7   :  { %620 = vmatpush3.bf16.msra.mxu0 %v619_v48 }
 0x2b5   :  { %v301_v42 = vpop.f32.mrb[2].mxu0 }
 0x2b6   :  { %v302_v43 = vadd.f32 %v503_v41, %v301_v42  ;;  %v568_v44 = vpop.f32.mrb[3].mxu0 }
 0x2b8   :  { %v305_v45 = vmax.f32 %v302_v43, 0.0 }
 0x2ba   :  { %578 = vmatmul.mubr.msk.f32.vlgmr.msra.gmra.mrb[2].mxu1 %vm41_vm0, %v305_v45 }
 0x38d   :  { %v388_v50 = vpop.f32.mrb[2].mxu1 }
 0x38e   :  { %v389_v51 = vadd.f32 %v506_v49, %v388_v50  ;;  %v579_v52 = vpop.f32.mrb[3].mxu1 }
 0x390   :  { %v392_v53 = vmax.f32 %v389_v51, 0.0 }
 0x392   :  { %589 = vmatmul.mubr.msk.f32.vlgmr.msra.gmra.mrb[4].mxu0 %vm41_vm0, %v392_v53 }
 0x465   :  { %v475_v55 = vpop.f32.mrb[4].mxu0 }
 0x466   :  { %v476_v56 = vadd.f32 %v509_v54, %v475_v55  ;;  %v590_v57 = vpop.f32.mrb[5].mxu0 }
 0x468   :  { %480 = vst.msk [vmem:[#allocation8] sm:$0xff] %vm479_vm3, %v476_v56 }
 0x469   :  { %684 = shalt.err (!%p681_p6)
}
 0x46a   :  { %s685_s24 = scalar_lea.hbm %s811_s3, 128 }
 0x46b   :  { %p686_p7 = scmp.ne.s32.totalorder %s811_s3, %s685_s24  ;;  %p689_p8 = scmp.lt.u32.totalorder %s685_s24, %s811_s3 }
 0x46d   :  { %p691_p9 = pnand %p689_p8, %p686_p7 }
 0x46f   :  { %694 = shalt.err (!%p691_p9)
}
 0x470   :  { %490 = dma.vmem_to_hbm [thread:$0]  %s488_s20, 128, %s811_s3, [#allocation5]  }
 0x471   :  { %699 = dma.done.wait [#allocation5], 128  }
 0x472   :  { %700 = vsyncadd [#allocation5], 4294967168 }
 0x473   :  { %494 = vsyncpa [#allocation4], 1 }
 0x474   :  { %495 = vsyncpa [#allocation7], 1 }
 0x475   :  { %496 = vsyncpa [#allocation5], 1 }

</bundles_post_ra>
